<compile_context>
chip_gen: v6e
topology: v6e:2x2x1
jax: 0.10.0
libtpu: 0.0.40
codegen_flags: <defaults>
</compile_context>

<pallas_src>
import functools

import jax
import jax.numpy as jnp
from jax.experimental import pallas as pl
from jax.experimental.pallas import tpu as pltpu

VMEM = pltpu.MemorySpace.VMEM


# --------------------------------------------------------------------------------------
# tile-size helpers
# --------------------------------------------------------------------------------------
def _pick_lane_tile(S, cin, cout, max_tn=8192, vmem_budget=8 * 1024 * 1024):
    """Largest multiple-of-128 divisor of S, capped by max_tn and a VMEM byte budget
    (double-buffered bf16 input + bf16 output tiles). Returns S itself if S % 128 != 0."""
    cap = vmem_budget // (4 * (cin + cout))          # 2 bufs * 2 B * (cin+cout) * TN
    cap = max(128, (cap // 128) * 128)
    max_tn = min(max_tn, cap)
    if S % 128 != 0:
        return S
    base = S // 128
    for k in range(min(base, max_tn // 128), 0, -1):
        if base % k == 0:
            return 128 * k
    return 128


def _pick_dpatch_tile(Dp, p0, H, W, max_patches=16, max_bytes=4 * 1024 * 1024):
    """Depth-patches per L1 tile: divides Dp, bounded patch count and f32 slab bytes.
    Budget chosen to stay comfortable on 64 MiB-VMEM (v7x) and 16 MiB scoped (v5e)."""
    best = 1
    for n in range(1, Dp + 1):
        if Dp % n:
            continue
        if n > max_patches or n * p0 * H * W * 4 > max_bytes:
            break
        best = n
    # TODO(synk): if even a single depth-patch slab exceeds max_bytes (very large H*W),
    # an H/W tiling fallback is needed; not hit at SimMIM image sizes.
    return best


# --------------------------------------------------------------------------------------
# Kernel 1: 1x1x1 Conv3d  ==  per-batch channel matmul, lane axis = voxels, bf16 store
# --------------------------------------------------------------------------------------
def _conv1x1_kernel(w_ref, b_ref, z_ref, o_ref):
    # w: (Cout, Cin) bf16 (resident), b: (Cout, 1) f32 (resident),
    # z: (1, Cin, TN) bf16, o: (1, Cout, TN) bf16   -- TN lane-dense.
    acc = jnp.dot(w_ref[...], z_ref[0], preferred_element_type=jnp.float32)
    o_ref[0] = (acc + b_ref[...]).astype(o_ref.dtype)


def conv1x1_3d(z, weight, bias):
    """z: (B, Cin, d, h, w); weight: (Cout, Cin); bias: (Cout,) -> (B, Cout, d, h, w) bf16."""
    B, Cin, d, h, w = z.shape
    Cout = weight.shape[0]
    S = d * h * w
    TN = _pick_lane_tile(S, Cin, Cout)
    zf = z.reshape(B, Cin, S).astype(jnp.bfloat16)      # contiguous reshape, bf16 MXU feed
    out = pl.pallas_call(
        _conv1x1_kernel,
        out_shape=jax.ShapeDtypeStruct((B, Cout, S), jnp.bfloat16),
        grid=(B, S // TN),
        in_specs=[
            pl.BlockSpec((Cout, Cin), lambda b, j: (0, 0)),     # weight: resident
            pl.BlockSpec((Cout, 1), lambda b, j: (0, 0)),       # bias:   resident
            pl.BlockSpec((1, Cin, TN), lambda b, j: (b, 0, j)),
        ],
        out_specs=pl.BlockSpec((1, Cout, TN), lambda b, j: (b, 0, j)),
        compiler_params=pltpu.CompilerParams(
            dimension_semantics=("parallel", "parallel")),
    )(weight.astype(jnp.bfloat16), bias.reshape(Cout, 1).astype(jnp.float32), zf)
    return out.reshape(B, Cout, d, h, w)


# --------------------------------------------------------------------------------------
# PixelShuffle3D (pure data movement -> plain JAX; operates on bf16 so traffic is halved)
# --------------------------------------------------------------------------------------
def pixel_shuffle_3d(x, r):
    B, C, D, H, W = x.shape
    c = C // (r ** 3)
    x = x.reshape(B, c, r, r, r, D, H, W)
    x = jnp.transpose(x, (0, 1, 5, 2, 6, 3, 7, 4))
    return x.reshape(B, c, D * r, H * r, W * r)


# --------------------------------------------------------------------------------------
# Kernel 2: masked L1 reconstruction numerator (loss == 'mask_only')
#   numerator = sum(|x_org - x_rec| * mask_up).  The upsampled mask is never streamed:
#   the |diff| slab is depth-pooled per patch (free reshape + vreg adds), and the small
#   patch mask is expanded to (H, W) once per depth patch with two tiny exact 0/1 bf16
#   matmuls, then one fused multiply+reduce.  Each grid step writes its own partial.
# --------------------------------------------------------------------------------------
def _masked_l1_kernel(xo_ref, xr_ref, m_ref, eh_ref, ewt_ref, out_ref, *, p0, n_dpatch):
    H = xo_ref.shape[-2]
    W = xo_ref.shape[-1]
    # one slab-wide abs-diff (x_rec streamed bf16, upcast before the VPU op: v5e-safe)
    diff = jnp.abs(xo_ref[0, 0] - xr_ref[0, 0].astype(jnp.float32))       # (TD, H, W)
    # pool depth inside each patch: reshape of the leading dim is free, sum = vreg adds
    diff_d = diff.reshape(n_dpatch, p0, H, W).sum(axis=1)                 # (n_dpatch, H, W)

    eh = eh_ref[...]                          # (H, Hp)  bf16 0/1 (resident)
    ewt = ewt_ref[...]                        # (Wp, W)  bf16 0/1 (resident)
    acc = jnp.zeros((H, W), jnp.float32)
    for s in range(n_dpatch):                 # small (<=16); 2 tiny exact matmuls / patch
        t = jnp.dot(eh, m_ref[0, s], preferred_element_type=jnp.float32)  # (H, Wp)
        me = jnp.dot(t.astype(jnp.bfloat16), ewt,
                     preferred_element_type=jnp.float32)                  # (H, W) mask slab
        acc = acc + diff_d[s] * me
    out_ref[0, 0, 0] = jnp.sum(acc, keepdims=True)                        # (1, 1) partial


def masked_l1_numerator(x_org, x_rec, mask_small, patch_size):
    """sum over b,c,d,h,w of |x_org - x_rec| * mask_up (mask broadcast over channels)."""
    B, C, D, H, W = x_org.shape
    C_rec = x_rec.shape[1]
    p0, p1, p2 = patch_size
    Dp, Hp, Wp = D // p0, H // p1, W // p2
    n_dpatch = _pick_dpatch_tile(Dp, p0, H, W)
    TD = n_dpatch * p0
    NT = Dp // n_dpatch

    # constant 0/1 expansion matrices (tiny, resident in VMEM, exact in bf16)
    eh = (jnp.arange(H, dtype=jnp.int32)[:, None] // p1 ==
          jnp.arange(Hp, dtype=jnp.int32)[None, :]).astype(jnp.bfloat16)   # (H, Hp)
    ewt = (jnp.arange(Wp, dtype=jnp.int32)[:, None] ==
           jnp.arange(W, dtype=jnp.int32)[None, :] // p2).astype(jnp.bfloat16)  # (Wp, W)

    # x_rec channel indexing: follow x_org's channel when shapes match (bug fix), else 0.
    if C_rec == C:
        xr_map = lambda b, c, i: (b, c, i, 0, 0)
    else:
        xr_map = lambda b, c, i: (b, 0, i, 0, 0)

    partial = pl.pallas_call(
        functools.partial(_masked_l1_kernel, p0=p0, n_dpatch=n_dpatch),
        out_shape=jax.ShapeDtypeStruct((B, C, NT, 1, 1), jnp.float32),
        grid=(B, C, NT),
        in_specs=[
            pl.BlockSpec((1, 1, TD, H, W), lambda b, c, i: (b, c, i, 0, 0)),
            pl.BlockSpec((1, 1, TD, H, W), xr_map),
            pl.BlockSpec((1, n_dpatch, Hp, Wp), lambda b, c, i: (b, i, 0, 0)),
            pl.BlockSpec((H, Hp), lambda b, c, i: (0, 0)),
            pl.BlockSpec((Wp, W), lambda b, c, i: (0, 0)),
        ],
        out_specs=pl.BlockSpec((1, 1, 1, 1, 1), lambda b, c, i: (b, c, i, 0, 0)),
        compiler_params=pltpu.CompilerParams(
            dimension_semantics=("parallel", "parallel", "parallel"),
            vmem_limit_bytes=48 * 1024 * 1024),
    )(x_org.astype(jnp.float32), x_rec.astype(jnp.bfloat16),
      mask_small.astype(jnp.bfloat16), eh, ewt)
    return jnp.sum(partial)


# --------------------------------------------------------------------------------------
# Kernel 3: contrastive logits + both cross-entropies fused in one call
#   logits[i, j] = <h_i, h_j> * temp  (reference multiplies by self.temp, no L2 norm)
# --------------------------------------------------------------------------------------
def _contrastive_kernel(h_ref, lab_ref, out_ref, *, temp):
    h = h_ref[...]                                               # (B, F) bf16
    logits = jax.lax.dot_general(h, h, (((1,), (1,)), ((), ())),
                                 preferred_element_type=jnp.float32) * temp
    n = logits.shape[0]
    onehot = (jax.lax.broadcasted_iota(jnp.int32, (n, n), 1) ==
              lab_ref[...]).astype(jnp.float32)                  # onehot[i, j] = (j == lab[i])

    def ce(lg):
        m = jnp.max(lg, axis=1, keepdims=True)
        lse = m + jnp.log(jnp.sum(jnp.exp(lg - m), axis=1, keepdims=True))   # (n, 1)
        picked = jnp.sum(lg * onehot, axis=1, keepdims=True)                 # (n, 1)
        return jnp.sum(lse - picked, keepdims=True) / n                      # (1, 1)

    out_ref[...] = 0.5 * (ce(logits) + ce(logits.T))


def contrastive_loss(h4, labels, temp):
    # Launch-overhead dominated at SimMIM batch sizes; bf16 Gram feed, f32 accumulation.
    B = h4.shape[0]
    h = h4.reshape(B, -1).astype(jnp.bfloat16)
    lab = labels.reshape(B, 1).astype(jnp.int32)
    out = pl.pallas_call(
        functools.partial(_contrastive_kernel, temp=float(temp)),
        out_shape=jax.ShapeDtypeStruct((1, 1), jnp.float32),
        in_specs=[pl.BlockSpec(memory_space=VMEM)] * 2,
        out_specs=pl.BlockSpec(memory_space=VMEM),
    )(h, lab)
    return out[0, 0]


# --------------------------------------------------------------------------------------
# Full forward (decoder='pixel_shuffle', loss='mask_only')
# --------------------------------------------------------------------------------------
def simmim_skip_light_forward(z, h4, x_org, mask, params, *,
                              encoder_stride, patch_size, in_chans, temperature):
    # x_rec = pixel_shuffle(conv1(z)) -- bf16 end to end (halves the image HBM streams)
    conv_out = conv1x1_3d(z, params["conv1_w"], params["conv1_b"])
    x_rec = pixel_shuffle_3d(conv_out, encoder_stride)

    p0, p1, p2 = patch_size
    B, Dp, Hp, Wp = mask.shape
    D, H, W = Dp * p0, Hp * p1, Wp * p2
    # Upsampled mask (module output): broadcast+reshape, no jnp.repeat gathers.
    m_up = jnp.broadcast_to(mask[:, :, None, :, None, :, None],
                            (B, Dp, p0, Hp, p1, Wp, p2)).reshape(B, D, H, W)[:, None]

    # masked L1 reconstruction loss: sum(|diff|*mask_up) / (mask_up.sum()+1e-5) / in_chans
    num = masked_l1_numerator(x_org, x_rec, mask, patch_size)
    den = jnp.sum(mask.astype(jnp.float32)) * (p0 * p1 * p2)     # == mask_up.sum(), exact
    loss_recon = num / (den + 1e-5) / in_chans

    # contrastive loss on hidden_states_out[4]
    labels = jnp.arange(h4.shape[0], dtype=jnp.int32)
    loss_cont = contrastive_loss(h4, labels, temperature)

    return loss_recon, loss_cont, x_rec, m_up


if __name__ == "__main__":
    key = jax.random.PRNGKey(0)
    k1, k2, k3, k4, k5, k6 = jax.random.split(key, 6)

    # Small shapes consistent with the module wiring.
    B = 2
    num_features = 16          # encoder.num_features (synthetic)
    encoder_stride = 4
    patch_size = (2, 2, 2)     # encoder.patch_size (synthetic)
    in_chans = 1               # encoder.in_chans (synthetic)
    temperature = 0.07

    Cin = 2 * num_features             # conv1 in_channels = 2 * num_features = 32
    Cout = encoder_stride ** 3 * 1     # conv1 out_channels = stride^3 = 64
    d = h = w = 4                      # encoder bottleneck spatial size
    D = H = W = d * encoder_stride     # reconstructed image spatial size = 16

    z = jax.random.normal(k1, (B, Cin, d, h, w), jnp.float32)            # bottleneck
    h4 = jax.random.normal(k2, (B, 64, 2, 2, 2), jnp.float32)            # hidden_states_out[4]
    x_org = jax.random.normal(k3, (B, in_chans, D, H, W), jnp.float32)   # original image
    mask = (jax.random.uniform(
        k4, (B, D // patch_size[0], H // patch_size[1], W // patch_size[2])
    ) > 0.5).astype(jnp.float32)

    params = {
        "conv1_w": 0.02 * jax.random.normal(k5, (Cout, Cin), jnp.float32),
        "conv1_b": 0.01 * jax.random.normal(k6, (Cout,), jnp.float32),
    }

    loss_recon, loss_cont, x_rec, m_up = simmim_skip_light_forward(
        z, h4, x_org, mask, params,
        encoder_stride=encoder_stride, patch_size=patch_size,
        in_chans=in_chans, temperature=temperature,
    )
    jax.block_until_ready((loss_recon, loss_cont, x_rec, m_up))

    assert x_rec.shape == (B, 1, D, H, W)
    assert m_up.shape == (B, 1, D, H, W)

    # --- pure-JAX reference checks (conv/x_rec carry bf16 MXU + bf16-store error) -------
    zt = jnp.transpose(z, (0, 2, 3, 4, 1)).reshape(-1, Cin)
    conv_ref = (zt @ params["conv1_w"].T + params["conv1_b"]).reshape(B, d, h, w, Cout)
    x_rec_ref = pixel_shuffle_3d(jnp.transpose(conv_ref, (0, 4, 1, 2, 3)), encoder_stride)
    assert jnp.allclose(x_rec.astype(jnp.float32), x_rec_ref, rtol=1e-1, atol=2e-2)

    x_rec_f32 = x_rec.astype(jnp.float32)
    ref_num = jnp.sum(jnp.abs(x_org - x_rec_f32) * m_up)
    ref_recon = ref_num / (jnp.sum(m_up) + 1e-5) / in_chans
    assert jnp.allclose(loss_recon, ref_recon, rtol=1e-3, atol=1e-5)

    hf = h4.reshape(B, -1)
    lg = (hf @ hf.T) * temperature
    lt = jnp.mean(jax.nn.logsumexp(lg, axis=1) - jnp.diagonal(lg))
    li = jnp.mean(jax.nn.logsumexp(lg.T, axis=1) - jnp.diagonal(lg.T))
    assert jnp.allclose(loss_cont, 0.5 * (lt + li), rtol=1e-2, atol=1e-3)

    print("KERNEL_OK")
</pallas_src>

<mosaic_0001>
module attributes {stable_mosaic.version = 11 : i64} {
  func.func @_conv1x1_kernel(%arg0: i32, %arg1: i32, %arg2: memref<64x32xbf16, #tpu.memory_space<vmem>>, %arg3: memref<64x1xf32, #tpu.memory_space<vmem>>, %arg4: memref<1x32x64xbf16, #tpu.memory_space<vmem>>, %arg5: memref<1x64x64xbf16, #tpu.memory_space<vmem>>) attributes {dimension_semantics = [#tpu.dimension_semantics<parallel>, #tpu.dimension_semantics<parallel>], iteration_bounds = array<i64: 2, 1>, scalar_prefetch = 0 : i64, scratch_operands = 0 : i64, tpu.core_type = #tpu.core_type<tc>, window_params = [{pipeline_mode = #tpu.pipeline_mode<synchronous>, transform_indices = @transform_0, window_bounds = array<i64: 64, 32>}, {pipeline_mode = #tpu.pipeline_mode<synchronous>, transform_indices = @transform_1, window_bounds = array<i64: 64, 1>}, {transform_indices = @transform_2, window_bounds = array<i64: 1, 32, 64>}, {transform_indices = @transform_3, window_bounds = array<i64: 1, 64, 64>}]} {
    %c0 = arith.constant 0 : index
    %c0_0 = arith.constant 0 : index
    %0 = vector.load %arg2[%c0, %c0_0] : memref<64x32xbf16, #tpu.memory_space<vmem>>, vector<64x32xbf16>
    %c0_1 = arith.constant 0 : index
    %c0_2 = arith.constant 0 : index
    %c0_3 = arith.constant 0 : index
    %1 = vector.load %arg4[%c0_1, %c0_2, %c0_3] : memref<1x32x64xbf16, #tpu.memory_space<vmem>>, vector<1x32x64xbf16>
    %2 = vector.shape_cast %1 : vector<1x32x64xbf16> to vector<32x64xbf16>
    %cst = arith.constant dense<0.000000e+00> : vector<64x64xf32>
    %3 = tpu.matmul %0, %2, %cst {dimension_numbers = #tpu.dot_dimension_numbers<[1], [0], [0], [1], [0, 0, 1, 1], [], []>} : vector<64x32xbf16>, vector<32x64xbf16>, vector<64x64xf32> -> vector<64x64xf32>
    %c0_4 = arith.constant 0 : index
    %c0_5 = arith.constant 0 : index
    %4 = vector.load %arg3[%c0_4, %c0_5] : memref<64x1xf32, #tpu.memory_space<vmem>>, vector<64x1xf32>
    %5 = vector.broadcast %4 : vector<64x1xf32> to vector<64x64xf32>
    %6 = arith.addf %3, %5 : vector<64x64xf32>
    %7 = arith.truncf %6 : vector<64x64xf32> to vector<64x64xbf16>
    %c0_6 = arith.constant 0 : index
    %c0_7 = arith.constant 0 : index
    %c0_8 = arith.constant 0 : index
    %8 = vector.load %arg5[%c0_6, %c0_7, %c0_8] : memref<1x64x64xbf16, #tpu.memory_space<vmem>>, vector<1x64x64xbf16>
    %9 = vector.shape_cast %8 : vector<1x64x64xbf16> to vector<64x64xbf16>
    %10 = vector.shape_cast %7 : vector<64x64xbf16> to vector<1x64x64xbf16>
    tpu.vector_store %arg5[%c0_6, %c0_7, %c0_8], %10 {strides = array<i32>} : memref<1x64x64xbf16, #tpu.memory_space<vmem>>, vector<1x64x64xbf16>,
    return
  }
  func.func @transform_0(%arg0: i32, %arg1: i32) -> (i32, i32) {
    %c0_i32 = arith.constant 0 : i32
    %c0_i32_0 = arith.constant 0 : i32
    %c0_i32_1 = arith.constant 0 : i32
    return %c0_i32, %c0_i32_0 : i32, i32
  }
  func.func @transform_1(%arg0: i32, %arg1: i32) -> (i32, i32) {
    %c0_i32 = arith.constant 0 : i32
    %c0_i32_0 = arith.constant 0 : i32
    %c0_i32_1 = arith.constant 0 : i32
    return %c0_i32, %c0_i32_0 : i32, i32
  }
  func.func @transform_2(%arg0: i32, %arg1: i32) -> (i32, i32, i32) {
    %c0_i32 = arith.constant 0 : i32
    %c0_i32_0 = arith.constant 0 : i32
    return %arg0, %c0_i32, %arg1 : i32, i32, i32
  }
  func.func @transform_3(%arg0: i32, %arg1: i32) -> (i32, i32, i32) {
    %c0_i32 = arith.constant 0 : i32
    %c0_i32_0 = arith.constant 0 : i32
    return %arg0, %c0_i32, %arg1 : i32, i32, i32
  }
}

</mosaic_0001>

<bundles_post_ra>
// kernel: tpu_custom_call.1
= control target key start
LH: loop header
LB: loop body
LE: loop exit
PB: predicated region body
PF: predicated region fallthrough
CT: control target
= control target key end

     0   :  { %8 = vsyncpa [#allocation3], 0  ;;  %s896_s0 = inlined_call_operand.vmem [shape: bf16[64,32], index: 0, kind: input, shape index: {}]   ;;  %s897_s1 = inlined_call_operand.vmem [shape: f32[64,1], index: 1, kind: input, shape index: {}]   ;;  %s898_s2 = inlined_call_operand.vmem [shape: bf16[2,32,64], index: 2, kind: input, shape index: {}]   ;;  %s899_s3 = inlined_call_operand.hbm [shape: bf16[2,64,64], index: 3, kind: output, shape index: {}]  }
   0x1   :  { %10 = vsyncpa [#allocation3 + $0x1], 0  ;;  %s730_s12 = smov 0   ;;  %s732_s13 = smov 0  }
   0x2   :  { %s734_s14 = smov 0   ;;  %s736_s15 = smov 0  }
   0x3   :  { %s738_s16 = smov 0   ;;  %s740_s17 = smov 0  }
   0x4 LB: > { %s499_s18 = sadd.s32 4294967295, %s704_s17   ;;  %s500_s19 = sadd.s32 4294967294, %s704_s17   ;;  %s704_s17 = sphi %s740_s17, %s16_s17   ;;  %s700_s16 = sphi %s738_s16, %s906_s16   ;;  %s696_s15 = sphi %s736_s15, %s905_s15   ;;  %s692_s14 = sphi %s734_s14, %s904_s14   ;;  %s688_s13 = sphi %s732_s13, %s903_s13   ;;  %s684_s12 = sphi %s730_s12, %s902_s12  }
   0x5   : > { %s28_s20 = sadd.s32 1, %s700_s16  ;;  %s107_s21 = sadd.s32 1, %s692_s14 }
   0x6   : > { %p30_p0 = scmp.ge.s32.totalorder %s28_s20, 2  ;;  %p117_p1 = scmp.ne.s32.totalorder %s692_s14, %s688_s13 }
   0x7   : > { %p118_p2 = scmp.eq.s32.totalorder %s499_s18, 1  ;;  %p123_p3 = scmp.ne.s32.totalorder %s688_s13, %s684_s12 }
   0x8   : > { %s908_s20 = smov (%p30_p0, %s28_s20), 0  ;;  %p124_p5 = scmp.eq.s32.totalorder %s500_s19, 1 }
   0x9   : > { %p770_p4 = por %p118_p2, %p117_p1  ;;  %s102_s23 = ssub.s32 %s700_s16, %s908_s20 }
   0xa   : > { %p503_p6 = scmp.ge.s32.totalorder %s704_s17, 1  ;;  %p105_p7 = scmp.eq.s32.totalorder %s102_s23, 0 }
   0xb   : > { %p777_p8 = por %p124_p5, %p123_p3  ;;  %p159_p9 = scmp.lt.s32.totalorder %s704_s17, 3 }
   0xc   : > { %s783_s25 = scalar_select %p105_p7, %s692_s14, %s107_s21  }
   0xd   : > { %p160_p10 = pnand %p503_p6, %p159_p9 }
   0xe   : > { %p186_p11 = scmp.lt.s32.totalorder (!%p160_p10), %s696_s15, 1  ;;  %s539_s21 = sshll.u32 (!%p160_p10), %s696_s15, 9 }
   0xf   : > { %163 = sbr.rel (%p160_p10) target bundleno = 250 (0xfa), region = 32  ;;  %s841_s28 = scalar_lea.hbm (!%p160_p10), %s899_s3, %s539_s21 }
  0x14   : > { %v624_v0 = vld [vmem:[%s896_s0] sm:$0xff]   ;;  %vm287_vm0 = vcmask 261120   ;;  %v625_v1 = vld [vmem:[%s896_s0 + $0x10] sm:$0xff]   ;;  %s187_s30 = scalar_select %p186_p11, %s696_s15, 1  ;;  %v706_v2 = vmov 0   ;;  %v210_v7 = vld [vmem:[%s897_s1 + $0x18] sm:$0xff] }
  0x15   : > { %550 = vmatprep.mubr.msk.bf16.mxu0 %vm287_vm0, %v624_v0  ;;  %554 = vmatprep.mubr.msk.bf16.mxu1 %vm287_vm0, %v625_v1  ;;  %v209_v3 = vld [vmem:[%s897_s1 + $0x10] sm:$0xff]  ;;  %v207_v4 = vld [vmem:[%s897_s1] sm:$0xff]  ;;  %v208_v8 = vld [vmem:[%s897_s1 + $0x8] sm:$0xff]  ;;  %vm397_vm1 = vcmask 519168  }
  0x16   : > { %s530_s4 = sshll.u32 %s187_s30, 4  ;;  %621 = vset.pattern.permute.xlu1 %v706_v2  ;;  %620 = vset.pattern.permute.xlu0 %v706_v2  ;;  %v626_v9 = vld [vmem:[%s896_s0 + $0x8] sm:$0xff]   ;;  %v627_v10 = vld [vmem:[%s896_s0 + $0x18] sm:$0xff]   ;;  %v211_v12 = vld [vmem:[%s897_s1 + $0x20] sm:$0xff]  ;;  %s707_s30 = smov [#allocation2]  }
  0x17   : > { %s193_s11 = scalar_lea.vmem %s898_s2, %s530_s4  ;;  %227 = vperm.xlu1 %621, %v209_v3   ;;  %217 = vperm.xlu0 %620, %v207_v4   ;;  %v212_v11 = vld [vmem:[%s897_s1 + $0x28] sm:$0xff]  ;;  %v214_v13 = vld [vmem:[%s897_s1 + $0x38] sm:$0xff]  ;;  %v213_v14 = vld [vmem:[%s897_s1 + $0x30] sm:$0xff]  ;;  %s632_s4 = sshll.u32 %s707_s30, 4  ;;  %s633_s4 = int_to_ptr.vmem [resolvable:$false] %s632_s4 }
  0x18   : > { %v622_v5 = vld [vmem:[%s193_s11 + $0x8] sm:$0xff]   ;;  %v623_v6 = vld [vmem:[%s193_s11] sm:$0xff]   ;;  %s183_s11 = sand.u32 1, %s688_s13   ;;  %s634_s5 = scalar_lea.vmem %s633_s4, 1024 }
  0x19   : > { %546 = vmatprep.subr.bf16.mxu0 %v622_v5  ;;  %558 = vmatprep.subr.bf16.mxu1 %v622_v5  ;;  %s504_s18 = sshll.u32 %s183_s11, 5  ;;  %s851_s15 = scalar_lea.sflag [#allocation3], %s183_s11 }
  0x1a   : > { %547 = vmatpush3.bf16.msra.mxu0 %v622_v5  ;;  %560 = vmatpush3.bf16.msra.mxu1 %v622_v5  ;;  %s185_s19 = scalar_lea.vmem [#allocation2], %s504_s18 }
  0x1b   : > { %548 = vmatprep.subr.bf16.mxu0 %v623_v6  ;;  %559 = vmatprep.subr.bf16.mxu1 %v623_v6  ;;  %s421_s23 = sshll.u32 %s185_s19, 4  ;;  %s843_s23 = int_to_ptr.vmem [resolvable:$true] %s421_s23 }
  0x1c   : > { %232 = vperm.xlu1 %621, %v210_v7   ;;  %222 = vperm.xlu0 %620, %v208_v8   ;;  %s628_s29 = scalar_lea.vmem %s843_s23, 512  ;;  %p635_p1 = scmp.lt.s32.totalorder %s843_s23, %s633_s4 }
  0x1d   : > { %p629_p12 = scmp.ne.s32.totalorder %s843_s23, %s628_s29  ;;  %p636_p2 = scmp.lt.s32.totalorder %s634_s5, %s628_s29 }
  0x1e   : > { %549 = vmatpush3.bf16.msra.mxu0 %v623_v6  ;;  %561 = vmatpush3.bf16.msra.mxu1 %v623_v6 }
  0x1f   : > { %p630_p13 = pnand %p629_p12, %p770_p4  ;;  %p637_p3 = por %p636_p2, %p635_p1 }
  0x20   : > { %242 = vperm.xlu1 %621, %v212_v11   ;;  %237 = vperm.xlu0 %620, %v211_v12  }
  0x21   : > { %551 = vmatmul.mubr.msk.bf16.vlgmr.msra.gmra.mxu0 %vm287_vm0, %v626_v9  ;;  %555 = vmatmul.mubr.msk.bf16.vlgmr.msra.gmra.mxu1 %vm287_vm0, %v627_v10  ;;  %p631_p0 = pneg %p630_p13 }
  0x23   : > { %p638_p5 = pnand %p637_p3, %p631_p0 }
  0x24   : > { %252 = vperm.xlu1 %621, %v214_v13   ;;  %247 = vperm.xlu0 %620, %v213_v14  }
  0x92   : > { %v218_v15 = vpop.permute.xlu0 %217  ;;  %v228_v16 = vpop.permute.xlu1 %227 }
  0x97   : > { %v223_v17 = vpop.permute.xlu0 %222  ;;  %v233_v18 = vpop.permute.xlu1 %232 }
  0x9b   : > { %v238_v19 = vpop.permute.xlu0 %237  ;;  %v243_v20 = vpop.permute.xlu1 %242 }
  0x9f   : > { %v248_v21 = vpop.permute.xlu0 %247  ;;  %v253_v28 = vpop.permute.xlu1 %252 }
  0xe1   : > { %v552_v22 = vpop.f32.mrf.mxu0  ;;  %v556_v23 = vpop.f32.mrf.mxu1 }
  0xe2   : > { %v343_v24 = vadd.f32 %v552_v22, %v228_v16  ;;  %v359_v25 = vadd.f32 %v556_v23, %v248_v21 }
  0xe3   : > { %v334_v26 = vpop.f32.mrf.mxu0  ;;  %v350_v27 = vpop.f32.mrf.mxu1 }
  0xe4   : > { %v533_v29 = vpack.c.bf16 %v343_v24, %v343_v24  ;;  %v537_v30 = vpack.c.bf16 %v359_v25, %v359_v25  ;;  %v335_v31 = vadd.f32 %v334_v26, %v218_v15  ;;  %v351_v32 = vadd.f32 %v350_v27, %v238_v19 }
  0xe5   : > { %v553_v33 = vpop.f32.mrf.mxu0  ;;  %v557_v34 = vpop.f32.mrf.mxu1 }
  0xe6   : > { %400 = vst.msk [vmem:[%s185_s19 + $0x8] sm:$0xf] %vm397_vm1, %v533_v29  ;;  %404 = vst.msk [vmem:[%s185_s19 + $0x18] sm:$0xf] %vm397_vm1, %v537_v30  ;;  %v531_v35 = vpack.c.bf16 %v335_v31, %v335_v31  ;;  %v535_v36 = vpack.c.bf16 %v351_v32, %v351_v32  ;;  %v346_v37 = vadd.f32 %v553_v33, %v233_v18 }
  0xe7   : > { %v362_v38 = vadd.f32 %v557_v34, %v253_v28  ;;  %v337_v39 = vpop.f32.mrf.mxu0  ;;  %v353_v40 = vpop.f32.mrf.mxu1 }
  0xe8   : > { %398 = vst.msk [vmem:[%s185_s19] sm:$0xf] %vm397_vm1, %v531_v35  ;;  %402 = vst.msk [vmem:[%s185_s19 + $0x10] sm:$0xf] %vm397_vm1, %v535_v36  ;;  %v534_v41 = vpack.c.bf16 %v346_v37, %v346_v37  ;;  %v338_v43 = vadd.f32 %v337_v39, %v223_v17  ;;  %v354_v44 = vadd.f32 %v353_v40, %v243_v20 }
  0xe9   : > { %v538_v42 = vpack.c.bf16 %v362_v38, %v362_v38 }
  0xea   : > { %401 = vst.msk [vmem:[%s185_s19 + $0xc] sm:$0xf] %vm397_vm1, %v534_v41  ;;  %v532_v45 = vpack.c.bf16 %v338_v43, %v338_v43  ;;  %v536_v46 = vpack.c.bf16 %v354_v44, %v354_v44 }
  0xeb   : > { %405 = vst.msk [vmem:[%s185_s19 + $0x1c] sm:$0xf] %vm397_vm1, %v538_v42 }
  0xec   : > { %399 = vst.msk [vmem:[%s185_s19 + $0x4] sm:$0xf] %vm397_vm1, %v532_v45  ;;  %403 = vst.msk [vmem:[%s185_s19 + $0x14] sm:$0xf] %vm397_vm1, %v536_v46 }
  0xed   : > { %641 = shalt.err (!%p638_p5)
}
  0xee   : > { %s642_s6 = scalar_lea.hbm %s841_s28, 512  ;;  %s646_s9 = scalar_lea.hbm %s899_s3, 1024 }
  0xef   : > { %p643_p6 = scmp.ne.s32.totalorder %s841_s28, %s642_s6  ;;  %p647_p10 = scmp.lt.s32.totalorder %s841_s28, %s899_s3 }
  0xf0   : > { %p648_p11 = scmp.lt.s32.totalorder %s646_s9, %s642_s6 }
  0xf1   : > { %p644_p7 = pnand %p643_p6, %p770_p4 }
  0xf2   : > { %p649_p12 = por %p648_p11, %p647_p10 }
  0xf3   : > { %p645_p9 = pneg %p644_p7 }
  0xf5   : > { %p650_p13 = pnand %p649_p12, %p645_p9 }
  0xf7   : > { %653 = shalt.err (!%p650_p13)
}
  0xf8   : > { %s708_s18 = smov 64   ;;  %s709_s19 = smov 4  }
  0xf9   : > { %562 = dma.vmem_to_hbm [thread:$0]  (%p770_p4), %s843_s23, 512, %s841_s28, %s851_s15, %s708_s18, %s708_s18, %s709_s19  }
  0xfa PF: > { %p568_p0 = scmp.ge.s32.totalorder %s704_s17, 2  ;;  %s436_s21 = sand.u32 1, %s684_s12  }
  0xfb   : > { %s437_s26 = scalar_lea.sflag [#allocation3], %s436_s21 }
  0xfc   : > { %p565_p1 = pnand %p568_p0, %p777_p8 }
  0xfe   : > { %p566_p2 = pneg %p565_p1 }
 0x100   : > { %679 = dma.done.wait (%p566_p2), %s437_s26, 512  }
 0x101   : > { %681 = vsyncadd (%p566_p2), %s437_s26, 4294966784  ;;  %s16_s17 = sadd.s32 1, %s704_s17   ;;  %s902_s12 = smov %s688_s13 }
 0x102   : > { %p13_p3 = scmp.ge.s32.totalorder %s16_s17, 4   ;;  %s903_s13 = smov %s692_s14 }
 0x103   : > { %s904_s14 = smov %s783_s25  ;;  %s905_s15 = smov %s700_s16 }
 0x104   : > { %s906_s16 = smov %s908_s20  ;;  %15 = sbr.rel (!%p13_p3) target bundleno = 4 (0x4), region = 67 }
 0x109   :  { %442 = vsyncpa [#allocation3], 1 }
 0x10a   :  { %444 = vsyncpa [#allocation3 + $0x1], 1 }

</bundles_post_ra>
